<compile_context>
chip_gen: v7x
topology: tpu7x:2x2x1
jax: 0.10.0
libtpu: 0.0.40
codegen_flags: <defaults>
</compile_context>

<pallas_src>
import functools

import numpy as np
import jax
import jax.numpy as jnp
from jax.experimental import pallas as pl
from jax.experimental.pallas import tpu as pltpu

POOL_SIZES = (1, 2, 3, 6)
_STAGE_BINS = tuple(s * s for s in POOL_SIZES)                       # (1, 4, 9, 36)
_STAGE_OFFS = tuple(int(o) for o in np.cumsum((0,) + _STAGE_BINS)[:-1])
SSP = int(sum(_STAGE_BINS))                                          # 50 packed bins


# ---------------------------------------------------------------------------
# Parameter-setup glue (deterministic, pure numpy): pooling / upsample matrices
# ---------------------------------------------------------------------------
def _adaptive_pool_matrix(size_in: int, size_out: int) -> np.ndarray:
    """PyTorch AdaptiveAvgPool1d as a (size_out, size_in) matrix."""
    P = np.zeros((size_out, size_in), np.float32)
    for i in range(size_out):
        start = (i * size_in) // size_out
        end = -(-((i + 1) * size_in) // size_out)  # ceil
        P[i, start:end] = 1.0 / float(end - start)
    return P


def _bilinear_upsample_matrix(size_out: int, size_in: int) -> np.ndarray:
    """1-D bilinear interpolation (align_corners=True) as (size_out, size_in)."""
    U = np.zeros((size_out, size_in), np.float32)
    for h in range(size_out):
        if size_in == 1:
            U[h, 0] = 1.0
            continue
        src = h * (size_in - 1) / (size_out - 1)
        i0 = min(int(np.floor(src)), size_in - 1)
        i1 = min(i0 + 1, size_in - 1)
        w1 = src - i0
        U[h, i0] += 1.0 - w1
        U[h, i1] += w1
    return U


# ---------------------------------------------------------------------------
# Pallas kernels
# ---------------------------------------------------------------------------
def ppm_kernel(x_ref, pt_ref, ut_ref, w_ref, out_ref, acc_ref, *, cout, num_stages):
    # x_ref:   (1, ci_tile, HW)   bf16  channel slab of the input feature map
    # pt_ref:  (HW, SSP)          bf16  packed pool operators [P_1^T | P_2^T | P_3^T | P_6^T]
    # ut_ref:  (S, SSP, HW)       bf16  per-stage upsample operators (rows of other
    #                                   stages' bins are zero, so no slicing needed)
    # w_ref:   (S, Cout, ci_tile) bf16  per-stage 1x1 conv weights (channel slab)
    # out_ref: (1, S*Cout, HW)    bf16  PPM pyramid features (x pass-through dropped)
    # acc_ref: (S, Cout, SSP)     f32   1x1-conv accumulator over the C_in reduction
    ci = pl.program_id(1)

    @pl.when(ci == 0)
    def _init():
        acc_ref[...] = jnp.zeros_like(acc_ref)

    x = x_ref[0]                                            # (ci_tile, HW)
    # Single packed adaptive-avg-pool matmul for all stages.
    pooled = jnp.dot(x, pt_ref[...], preferred_element_type=jnp.float32)
    pooled = pooled.astype(x.dtype)                         # (ci_tile, SSP)
    for s in range(num_stages):
        # 1x1 conv (channel reduction), accumulated over C_in tiles.  Columns that
        # belong to other stages are computed too (tiny waste) but are zeroed later
        # by the matching zero rows of ut_ref[s].
        acc_ref[s] += jnp.dot(w_ref[s], pooled, preferred_element_type=jnp.float32)

    @pl.when(ci == pl.num_programs(1) - 1)
    def _finalize():
        for s in range(num_stages):
            z = jnp.dot(acc_ref[s].astype(out_ref.dtype), ut_ref[s],
                        preferred_element_type=jnp.float32)
            out_ref[0, pl.ds(s * cout, cout), :] = z.astype(out_ref.dtype)


def bottleneck_kernel(x_ref, p_ref, wx_ref, wp_ref, m_ref, b_ref, out_ref, acc_ref,
                      *, width, hw):
    # x_ref:   (1, ctx, HW)       bf16  slab of the original input channels
    # p_ref:   (1, ctp, HW)       bf16  slab of the PPM (pyramid) channels
    # wx_ref:  (9, co_tile, ctx)  bf16  per-tap 3x3 weights for the x channels
    # wp_ref:  (9, co_tile, ctp)  bf16  per-tap 3x3 weights for the PPM channels
    # m_ref:   (9, 1, HW)         f32   per-tap boundary masks (0/1)
    # b_ref:   (co_tile, 1)       f32   bias  (lane-pads to 128 in VMEM; kept because a
    #                                   lane-dense bias would need an in-kernel transpose
    #                                   and the waste is only a few KiB)
    # out_ref: (1, co_tile, HW)   f32
    # acc_ref: (co_tile, HW)      f32   reduction accumulator over channel tiles
    kt = pl.program_id(2)

    @pl.when(kt == 0)
    def _init():
        acc_ref[...] = jnp.zeros_like(acc_ref)

    fx = x_ref[0]                                           # (ctx, HW)
    fp = p_ref[0]                                           # (ctp, HW)
    for k in range(9):
        dh, dw = k // 3 - 1, k % 3 - 1
        d = dh * width + dw                                 # flat source offset
        if d == 0:                                          # center tap: no shift, no mask
            sx, sp = fx, fp
        else:
            # shifted[:, i] == feat[:, i + d]; shift kept non-negative for Mosaic.
            sh = (-d) % hw
            sx = pltpu.roll(fx, shift=sh, axis=1)
            sp = pltpu.roll(fp, shift=sh, axis=1)
        contrib = (jnp.dot(wx_ref[k], sx, preferred_element_type=jnp.float32)
                   + jnp.dot(wp_ref[k], sp, preferred_element_type=jnp.float32))
        if d == 0:
            acc_ref[...] += contrib
        else:
            # The mask depends only on the spatial position, so it can be applied to the
            # narrow (co_tile,HW) contribution rather than the (ctx+ctp,HW) inputs.
            acc_ref[...] += contrib * m_ref[k]

    @pl.when(kt == pl.num_programs(2) - 1)
    def _finalize():
        out_ref[0] = acc_ref[...] + b_ref[...]


# ---------------------------------------------------------------------------
# Wrapper
# ---------------------------------------------------------------------------
def psp_head_forward(x, stage_w, bottleneck_w, bottleneck_b, *,
                     compute_dtype=jnp.bfloat16):
    """x: (N, C_in, H, W) float32; returns (N, channels, H, W) float32."""
    N, C_in, H, W = x.shape
    HW = H * W
    S = len(POOL_SIZES)
    Cout = stage_w.shape[1]
    CP = S * Cout                           # PPM output channels (pass-through dropped)
    C_tot = C_in + CP

    # --- deterministic host-side setup: packed pool / zero-padded upsample operators --
    PT = np.zeros((HW, SSP), np.float32)          # pooled = x @ PT  (one matmul, all stages)
    UT = np.zeros((S, SSP, HW), np.float32)       # per-stage upsample, foreign rows = 0
    for si, s in enumerate(POOL_SIZES):
        off, bins = _STAGE_OFFS[si], _STAGE_BINS[si]
        P = np.kron(_adaptive_pool_matrix(H, s), _adaptive_pool_matrix(W, s))          # (bins, HW)
        U = np.kron(_bilinear_upsample_matrix(H, s), _bilinear_upsample_matrix(W, s))  # (HW, bins)
        PT[:, off:off + bins] = P.T
        UT[si, off:off + bins, :] = U.T

    # Per-tap boundary masks for the fused 3x3 im2col on the flattened HW layout.
    hh, ww = np.meshgrid(np.arange(H), np.arange(W), indexing="ij")
    masks = np.zeros((9, 1, HW), np.float32)
    for k in range(9):
        dh, dw = k // 3 - 1, k % 3 - 1
        valid = (hh + dh >= 0) & (hh + dh < H) & (ww + dw >= 0) & (ww + dw < W)
        masks[k, 0] = valid.reshape(HW).astype(np.float32)

    cd = compute_dtype
    x_flat = x.reshape(N, C_in, HW).astype(cd)
    pt = jnp.asarray(PT).astype(cd)
    ut = jnp.asarray(UT).astype(cd)
    sw = stage_w.astype(cd)

    # --- PPM tiling / VMEM budget ----------------------------------------------------
    ci_tile = C_in
    for cand in (512, 256, 128):
        if C_in % cand == 0:
            ci_tile = cand
            break
    n_ci = C_in // ci_tile

    ppm_block_bytes = (2 * ci_tile * HW * 2           # x slab (double buffered)
                       + 2 * HW * SSP * 2             # PT
                       + 2 * S * SSP * HW * 2         # UT
                       + 2 * S * Cout * ci_tile * 2   # stage weights
                       + 2 * CP * HW * 2              # out
                       + S * Cout * SSP * 4)          # acc scratch
    ppm_vmem = min(max(int(ppm_block_bytes * 1.25) + (1 << 20), 32 << 20), 127 << 20)

    ppm_cost = pl.CostEstimate(
        flops=int(2 * N * SSP * (C_in * HW + S * Cout * C_in + Cout * HW)),
        transcendentals=0,
        bytes_accessed=int(2 * (N * C_in * HW + HW * SSP + S * SSP * HW
                                + S * Cout * C_in + N * CP * HW)))

    ppm = pl.pallas_call(
        functools.partial(ppm_kernel, cout=Cout, num_stages=S),
        out_shape=jax.ShapeDtypeStruct((N, CP, HW), cd),
        grid_spec=pltpu.PrefetchScalarGridSpec(
            num_scalar_prefetch=0,
            grid=(N, n_ci),
            in_specs=[
                pl.BlockSpec((1, ci_tile, HW), lambda n, ci: (n, ci, 0)),
                pl.BlockSpec((HW, SSP), lambda n, ci: (0, 0)),
                pl.BlockSpec((S, SSP, HW), lambda n, ci: (0, 0, 0)),
                pl.BlockSpec((S, Cout, ci_tile), lambda n, ci: (0, 0, ci)),
            ],
            out_specs=pl.BlockSpec((1, CP, HW), lambda n, ci: (n, 0, 0)),
            scratch_shapes=[pltpu.VMEM((S, Cout, SSP), jnp.float32)]),
        compiler_params=pltpu.CompilerParams(
            dimension_semantics=("parallel", "arbitrary"),
            vmem_limit_bytes=int(ppm_vmem)),
        cost_estimate=ppm_cost,
    )(x_flat, pt, ut, sw)

    # --- Bottleneck 3x3 conv (padding=1); x and PPM features read as separate slabs ---
    w_taps = jnp.transpose(bottleneck_w.reshape(Cout, C_tot, 9), (2, 0, 1))  # (9,Cout,C_tot)
    w9x = w_taps[:, :, :C_in].astype(cd)          # taps for the original x channels
    w9p = w_taps[:, :, C_in:].astype(cd)          # taps for the PPM channels
    m9 = jnp.asarray(masks)                       # f32 (multiplies f32 contributions)
    b_col = bottleneck_b.reshape(Cout, 1).astype(jnp.float32)

    # Channel-reduction tiling: kt walks matching slabs of x (ctx) and the PPM feature
    # (ctp), so the concatenation never has to be materialized in HBM.
    n_kt = 1
    for cand in (8, 4, 2):
        if (C_in % cand == 0 and CP % cand == 0
                and (C_in // cand) % 128 == 0 and (CP // cand) % 128 == 0):
            n_kt = cand
            break
    ctx, ctp = C_in // n_kt, CP // n_kt

    # Cout tiling gives v7x's two TensorCores a parallel axis even at N=1.
    n_co = 2 if (Cout % 16 == 0) else 1
    co_tile = Cout // n_co
    # TODO(synk): if profiling shows exposed weight DMA at large N, block several batch
    #             elements per grid step so w9x/w9p stay resident across them.

    bot_block_bytes = (2 * ctx * HW * 2 + 2 * ctp * HW * 2          # feature slabs
                       + 2 * 9 * co_tile * ctx * 2                  # w9x
                       + 2 * 9 * co_tile * ctp * 2                  # w9p
                       + 2 * 9 * HW * 4                             # masks
                       + 2 * co_tile * 128 * 4                      # bias (lane-padded)
                       + 2 * co_tile * HW * 4                       # f32 out
                       + co_tile * HW * 4)                          # acc scratch
    bot_vmem = min(max(int(bot_block_bytes * 1.25) + (1 << 20), 32 << 20), 127 << 20)

    bot_cost = pl.CostEstimate(
        flops=int(2 * 9 * N * Cout * C_tot * HW),
        transcendentals=0,
        bytes_accessed=int(2 * N * (C_in + CP) * HW + 2 * 9 * Cout * C_tot
                           + 4 * (9 * HW + N * Cout * HW + Cout)))

    out_flat = pl.pallas_call(
        functools.partial(bottleneck_kernel, width=W, hw=HW),
        out_shape=jax.ShapeDtypeStruct((N, Cout, HW), jnp.float32),
        grid_spec=pltpu.PrefetchScalarGridSpec(
            num_scalar_prefetch=0,
            grid=(N, n_co, n_kt),
            in_specs=[
                pl.BlockSpec((1, ctx, HW), lambda n, co, kt: (n, kt, 0)),
                pl.BlockSpec((1, ctp, HW), lambda n, co, kt: (n, kt, 0)),
                pl.BlockSpec((9, co_tile, ctx), lambda n, co, kt: (0, co, kt)),
                pl.BlockSpec((9, co_tile, ctp), lambda n, co, kt: (0, co, kt)),
                pl.BlockSpec((9, 1, HW), lambda n, co, kt: (0, 0, 0)),
                pl.BlockSpec((co_tile, 1), lambda n, co, kt: (co, 0)),
            ],
            out_specs=pl.BlockSpec((1, co_tile, HW), lambda n, co, kt: (n, co, 0)),
            scratch_shapes=[pltpu.VMEM((co_tile, HW), jnp.float32)]),
        compiler_params=pltpu.CompilerParams(
            dimension_semantics=("parallel", "parallel", "arbitrary"),
            vmem_limit_bytes=int(bot_vmem)),
        cost_estimate=bot_cost,
    )(x_flat, ppm, w9x, w9p, m9, b_col)

    return out_flat.reshape(N, Cout, H, W)


# ---------------------------------------------------------------------------
# Pure-JAX float32 reference (mirrors the PyTorch PSPHead forward)
# ---------------------------------------------------------------------------
def psp_head_reference(x, stage_w, bottleneck_w, bottleneck_b):
    N, C_in, H, W = x.shape
    feats = [x]
    for si, s in enumerate(POOL_SIZES):
        Ph = jnp.asarray(_adaptive_pool_matrix(H, s))
        Pw = jnp.asarray(_adaptive_pool_matrix(W, s))
        Uh = jnp.asarray(_bilinear_upsample_matrix(H, s))
        Uw = jnp.asarray(_bilinear_upsample_matrix(W, s))
        pooled = jnp.einsum("ph,qw,nchw->ncpq", Ph, Pw, x)
        conv = jnp.einsum("oc,ncpq->nopq", stage_w[si], pooled)
        up = jnp.einsum("hp,wq,nopq->nohw", Uh, Uw, conv)
        feats.append(up)
    cat = jnp.concatenate(feats, axis=1)
    out = jax.lax.conv_general_dilated(
        cat, bottleneck_w, window_strides=(1, 1), padding="SAME",
        dimension_numbers=("NCHW", "OIHW", "NCHW"))
    return out + bottleneck_b.reshape(1, -1, 1, 1)


# ---------------------------------------------------------------------------
# Demo
# ---------------------------------------------------------------------------
if __name__ == "__main__":
    key = jax.random.PRNGKey(0)
    N, C_in, H, W = 2, 8, 16, 16          # small shapes; H*W = 256 (lane-aligned)
    channels = 4
    S = len(POOL_SIZES)
    C_tot = C_in + S * channels

    k_x, k_w, k_wb, k_b = jax.random.split(key, 4)
    x = jax.random.normal(k_x, (N, C_in, H, W), jnp.float32)
    # Deterministic synthetic parameters (module __init__ shapes, no checkpoint).
    stage_w = 0.1 * jax.random.normal(k_w, (S, channels, C_in), jnp.float32)
    bottleneck_w = 0.05 * jax.random.normal(k_wb, (channels, C_tot, 3, 3), jnp.float32)
    bottleneck_b = 0.01 * jax.random.normal(k_b, (channels,), jnp.float32)

    out = jax.block_until_ready(
        psp_head_forward(x, stage_w, bottleneck_w, bottleneck_b))
    ref = jax.block_until_ready(
        psp_head_reference(x, stage_w, bottleneck_w, bottleneck_b))

    assert out.shape == (N, channels, H, W), out.shape
    assert bool(jnp.all(jnp.isfinite(out)))
    max_err = float(jnp.max(jnp.abs(out - ref)))
    assert max_err < 5e-2, f"max abs error vs f32 reference: {max_err}"
    print("KERNEL_OK")
</pallas_src>

<mosaic_0001>
module attributes {stable_mosaic.version = 11 : i64} {
  func.func @ppm_kernel(%arg0: i32, %arg1: i32, %arg2: memref<1x8x256xbf16, #tpu.memory_space<vmem>>, %arg3: memref<256x50xbf16, #tpu.memory_space<vmem>>, %arg4: memref<4x50x256xbf16, #tpu.memory_space<vmem>>, %arg5: memref<4x4x8xbf16, #tpu.memory_space<vmem>>, %arg6: memref<1x16x256xbf16, #tpu.memory_space<vmem>>, %arg7: memref<4x4x50xf32, #tpu.memory_space<vmem>>) attributes {dimension_semantics = [#tpu.dimension_semantics<parallel>, #tpu.dimension_semantics<arbitrary>], iteration_bounds = array<i64: 2, 1>, scalar_prefetch = 0 : i64, scratch_operands = 1 : i64, tpu.core_type = #tpu.core_type<tc>, window_params = [{transform_indices = @transform_0, window_bounds = array<i64: 1, 8, 256>}, {pipeline_mode = #tpu.pipeline_mode<synchronous>, transform_indices = @transform_1, window_bounds = array<i64: 256, 50>}, {pipeline_mode = #tpu.pipeline_mode<synchronous>, transform_indices = @transform_2, window_bounds = array<i64: 4, 50, 256>}, {transform_indices = @transform_3, window_bounds = array<i64: 4, 4, 8>}, {transform_indices = @transform_4, window_bounds = array<i64: 1, 16, 256>}]} {
    %c0_i32 = arith.constant 0 : i32
    %0 = arith.cmpi eq, %arg1, %c0_i32 : i32
    %1 = arith.extui %0 : i1 to i32
    %c0_i32_0 = arith.constant 0 : i32
    %2 = arith.cmpi ne, %1, %c0_i32_0 : i32
    scf.if %2 {
      %cst_44 = arith.constant 0.000000e+00 : f32
      %47 = vector.broadcast %cst_44 : f32 to vector<4x4x50xf32>
      %c0_45 = arith.constant 0 : index
      %c0_46 = arith.constant 0 : index
      %c0_47 = arith.constant 0 : index
      %48 = vector.load %arg7[%c0_45, %c0_46, %c0_47] : memref<4x4x50xf32, #tpu.memory_space<vmem>>, vector<4x4x50xf32>
      tpu.vector_store %arg7[%c0_45, %c0_46, %c0_47], %47 {strides = array<i32>} : memref<4x4x50xf32, #tpu.memory_space<vmem>>, vector<4x4x50xf32>,
    } else {
    }
    %c0 = arith.constant 0 : index
    %c0_1 = arith.constant 0 : index
    %c0_2 = arith.constant 0 : index
    %3 = vector.load %arg2[%c0, %c0_1, %c0_2] : memref<1x8x256xbf16, #tpu.memory_space<vmem>>, vector<1x8x256xbf16>
    %4 = vector.shape_cast %3 : vector<1x8x256xbf16> to vector<8x256xbf16>
    %c0_3 = arith.constant 0 : index
    %c0_4 = arith.constant 0 : index
    %5 = vector.load %arg3[%c0_3, %c0_4] : memref<256x50xbf16, #tpu.memory_space<vmem>>, vector<256x50xbf16>
    %cst = arith.constant dense<0.000000e+00> : vector<8x50xf32>
    %6 = tpu.matmul %4, %5, %cst {dimension_numbers = #tpu.dot_dimension_numbers<[1], [0], [0], [1], [0, 0, 1, 1], [], []>} : vector<8x256xbf16>, vector<256x50xbf16>, vector<8x50xf32> -> vector<8x50xf32>
    %7 = arith.truncf %6 : vector<8x50xf32> to vector<8x50xbf16>
    %c0_5 = arith.constant 0 : index
    %c0_6 = arith.constant 0 : index
    %c0_7 = arith.constant 0 : index
    %8 = vector.load %arg7[%c0_5, %c0_6, %c0_7] : memref<4x4x50xf32, #tpu.memory_space<vmem>>, vector<1x4x50xf32>
    %9 = vector.shape_cast %8 : vector<1x4x50xf32> to vector<4x50xf32>
    %c0_8 = arith.constant 0 : index
    %c0_9 = arith.constant 0 : index
    %c0_10 = arith.constant 0 : index
    %10 = vector.load %arg5[%c0_8, %c0_9, %c0_10] : memref<4x4x8xbf16, #tpu.memory_space<vmem>>, vector<1x4x8xbf16>
    %11 = vector.shape_cast %10 : vector<1x4x8xbf16> to vector<4x8xbf16>
    %cst_11 = arith.constant dense<0.000000e+00> : vector<4x50xf32>
    %12 = tpu.matmul %11, %7, %cst_11 {dimension_numbers = #tpu.dot_dimension_numbers<[1], [0], [0], [1], [0, 0, 1, 1], [], []>} : vector<4x8xbf16>, vector<8x50xbf16>, vector<4x50xf32> -> vector<4x50xf32>
    %13 = arith.addf %9, %12 : vector<4x50xf32>
    %c0_12 = arith.constant 0 : index
    %c0_13 = arith.constant 0 : index
    %c0_14 = arith.constant 0 : index
    %14 = vector.load %arg7[%c0_12, %c0_13, %c0_14] : memref<4x4x50xf32, #tpu.memory_space<vmem>>, vector<1x4x50xf32>
    %15 = vector.shape_cast %14 : vector<1x4x50xf32> to vector<4x50xf32>
    %16 = vector.shape_cast %13 : vector<4x50xf32> to vector<1x4x50xf32>
    tpu.vector_store %arg7[%c0_12, %c0_13, %c0_14], %16 {strides = array<i32>} : memref<4x4x50xf32, #tpu.memory_space<vmem>>, vector<1x4x50xf32>,
    %c1 = arith.constant 1 : index
    %c0_15 = arith.constant 0 : index
    %c0_16 = arith.constant 0 : index
    %17 = vector.load %arg7[%c1, %c0_15, %c0_16] : memref<4x4x50xf32, #tpu.memory_space<vmem>>, vector<1x4x50xf32>
    %18 = vector.shape_cast %17 : vector<1x4x50xf32> to vector<4x50xf32>
    %c1_17 = arith.constant 1 : index
    %c0_18 = arith.constant 0 : index
    %c0_19 = arith.constant 0 : index
    %19 = vector.load %arg5[%c1_17, %c0_18, %c0_19] : memref<4x4x8xbf16, #tpu.memory_space<vmem>>, vector<1x4x8xbf16>
    %20 = vector.shape_cast %19 : vector<1x4x8xbf16> to vector<4x8xbf16>
    %cst_20 = arith.constant dense<0.000000e+00> : vector<4x50xf32>
    %21 = tpu.matmul %20, %7, %cst_20 {dimension_numbers = #tpu.dot_dimension_numbers<[1], [0], [0], [1], [0, 0, 1, 1], [], []>} : vector<4x8xbf16>, vector<8x50xbf16>, vector<4x50xf32> -> vector<4x50xf32>
    %22 = arith.addf %18, %21 : vector<4x50xf32>
    %c1_21 = arith.constant 1 : index
    %c0_22 = arith.constant 0 : index
    %c0_23 = arith.constant 0 : index
    %23 = vector.load %arg7[%c1_21, %c0_22, %c0_23] : memref<4x4x50xf32, #tpu.memory_space<vmem>>, vector<1x4x50xf32>
    %24 = vector.shape_cast %23 : vector<1x4x50xf32> to vector<4x50xf32>
    %25 = vector.shape_cast %22 : vector<4x50xf32> to vector<1x4x50xf32>
    tpu.vector_store %arg7[%c1_21, %c0_22, %c0_23], %25 {strides = array<i32>} : memref<4x4x50xf32, #tpu.memory_space<vmem>>, vector<1x4x50xf32>,
    %c2 = arith.constant 2 : index
    %c0_24 = arith.constant 0 : index
    %c0_25 = arith.constant 0 : index
    %26 = vector.load %arg7[%c2, %c0_24, %c0_25] : memref<4x4x50xf32, #tpu.memory_space<vmem>>, vector<1x4x50xf32>
    %27 = vector.shape_cast %26 : vector<1x4x50xf32> to vector<4x50xf32>
    %c2_26 = arith.constant 2 : index
    %c0_27 = arith.constant 0 : index
    %c0_28 = arith.constant 0 : index
    %28 = vector.load %arg5[%c2_26, %c0_27, %c0_28] : memref<4x4x8xbf16, #tpu.memory_space<vmem>>, vector<1x4x8xbf16>
    %29 = vector.shape_cast %28 : vector<1x4x8xbf16> to vector<4x8xbf16>
    %cst_29 = arith.constant dense<0.000000e+00> : vector<4x50xf32>
    %30 = tpu.matmul %29, %7, %cst_29 {dimension_numbers = #tpu.dot_dimension_numbers<[1], [0], [0], [1], [0, 0, 1, 1], [], []>} : vector<4x8xbf16>, vector<8x50xbf16>, vector<4x50xf32> -> vector<4x50xf32>
    %31 = arith.addf %27, %30 : vector<4x50xf32>
    %c2_30 = arith.constant 2 : index
    %c0_31 = arith.constant 0 : index
    %c0_32 = arith.constant 0 : index
    %32 = vector.load %arg7[%c2_30, %c0_31, %c0_32] : memref<4x4x50xf32, #tpu.memory_space<vmem>>, vector<1x4x50xf32>
    %33 = vector.shape_cast %32 : vector<1x4x50xf32> to vector<4x50xf32>
    %34 = vector.shape_cast %31 : vector<4x50xf32> to vector<1x4x50xf32>
    tpu.vector_store %arg7[%c2_30, %c0_31, %c0_32], %34 {strides = array<i32>} : memref<4x4x50xf32, #tpu.memory_space<vmem>>, vector<1x4x50xf32>,
    %c3 = arith.constant 3 : index
    %c0_33 = arith.constant 0 : index
    %c0_34 = arith.constant 0 : index
    %35 = vector.load %arg7[%c3, %c0_33, %c0_34] : memref<4x4x50xf32, #tpu.memory_space<vmem>>, vector<1x4x50xf32>
    %36 = vector.shape_cast %35 : vector<1x4x50xf32> to vector<4x50xf32>
    %c3_35 = arith.constant 3 : index
    %c0_36 = arith.constant 0 : index
    %c0_37 = arith.constant 0 : index
    %37 = vector.load %arg5[%c3_35, %c0_36, %c0_37] : memref<4x4x8xbf16, #tpu.memory_space<vmem>>, vector<1x4x8xbf16>
    %38 = vector.shape_cast %37 : vector<1x4x8xbf16> to vector<4x8xbf16>
    %cst_38 = arith.constant dense<0.000000e+00> : vector<4x50xf32>
    %39 = tpu.matmul %38, %7, %cst_38 {dimension_numbers = #tpu.dot_dimension_numbers<[1], [0], [0], [1], [0, 0, 1, 1], [], []>} : vector<4x8xbf16>, vector<8x50xbf16>, vector<4x50xf32> -> vector<4x50xf32>
    %40 = arith.addf %36, %39 : vector<4x50xf32>
    %c3_39 = arith.constant 3 : index
    %c0_40 = arith.constant 0 : index
    %c0_41 = arith.constant 0 : index
    %41 = vector.load %arg7[%c3_39, %c0_40, %c0_41] : memref<4x4x50xf32, #tpu.memory_space<vmem>>, vector<1x4x50xf32>
    %42 = vector.shape_cast %41 : vector<1x4x50xf32> to vector<4x50xf32>
    %43 = vector.shape_cast %40 : vector<4x50xf32> to vector<1x4x50xf32>
    tpu.vector_store %arg7[%c3_39, %c0_40, %c0_41], %43 {strides = array<i32>} : memref<4x4x50xf32, #tpu.memory_space<vmem>>, vector<1x4x50xf32>,
    %c0_i32_42 = arith.constant 0 : i32
    %44 = arith.cmpi eq, %arg1, %c0_i32_42 : i32
    %45 = arith.extui %44 : i1 to i32
    %c0_i32_43 = arith.constant 0 : i32
    %46 = arith.cmpi ne, %45, %c0_i32_43 : i32
    scf.if %46 {
      %c0_44 = arith.constant 0 : index
      %c0_45 = arith.constant 0 : index
      %c0_46 = arith.constant 0 : index
      %47 = vector.load %arg7[%c0_44, %c0_45, %c0_46] : memref<4x4x50xf32, #tpu.memory_space<vmem>>, vector<1x4x50xf32>
      %48 = vector.shape_cast %47 : vector<1x4x50xf32> to vector<4x50xf32>
      %49 = arith.truncf %48 : vector<4x50xf32> to vector<4x50xbf16>
      %c0_47 = arith.constant 0 : index
      %c0_48 = arith.constant 0 : index
      %c0_49 = arith.constant 0 : index
      %50 = vector.load %arg4[%c0_47, %c0_48, %c0_49] : memref<4x50x256xbf16, #tpu.memory_space<vmem>>, vector<1x50x256xbf16>
      %51 = vector.shape_cast %50 : vector<1x50x256xbf16> to vector<50x256xbf16>
      %cst_50 = arith.constant dense<0.000000e+00> : vector<4x256xf32>
      %52 = tpu.matmul %49, %51, %cst_50 {dimension_numbers = #tpu.dot_dimension_numbers<[1], [0], [0], [1], [0, 0, 1, 1], [], []>} : vector<4x50xbf16>, vector<50x256xbf16>, vector<4x256xf32> -> vector<4x256xf32>
      %53 = arith.truncf %52 : vector<4x256xf32> to vector<4x256xbf16>
      %c0_51 = arith.constant 0 : index
      %c0_52 = arith.constant 0 : index
      %c0_53 = arith.constant 0 : index
      %54 = vector.load %arg6[%c0_51, %c0_52, %c0_53] : memref<1x16x256xbf16, #tpu.memory_space<vmem>>, vector<1x4x256xbf16>
      %55 = vector.shape_cast %54 : vector<1x4x256xbf16> to vector<4x256xbf16>
      %56 = vector.shape_cast %53 : vector<4x256xbf16> to vector<1x4x256xbf16>
      tpu.vector_store %arg6[%c0_51, %c0_52, %c0_53], %56 {strides = array<i32>} : memref<1x16x256xbf16, #tpu.memory_space<vmem>>, vector<1x4x256xbf16>,
      %c1_54 = arith.constant 1 : index
      %c0_55 = arith.constant 0 : index
      %c0_56 = arith.constant 0 : index
      %57 = vector.load %arg7[%c1_54, %c0_55, %c0_56] : memref<4x4x50xf32, #tpu.memory_space<vmem>>, vector<1x4x50xf32>
      %58 = vector.shape_cast %57 : vector<1x4x50xf32> to vector<4x50xf32>
      %59 = arith.truncf %58 : vector<4x50xf32> to vector<4x50xbf16>
      %c1_57 = arith.constant 1 : index
      %c0_58 = arith.constant 0 : index
      %c0_59 = arith.constant 0 : index
      %60 = vector.load %arg4[%c1_57, %c0_58, %c0_59] : memref<4x50x256xbf16, #tpu.memory_space<vmem>>, vector<1x50x256xbf16>
      %61 = vector.shape_cast %60 : vector<1x50x256xbf16> to vector<50x256xbf16>
      %cst_60 = arith.constant dense<0.000000e+00> : vector<4x256xf32>
      %62 = tpu.matmul %59, %61, %cst_60 {dimension_numbers = #tpu.dot_dimension_numbers<[1], [0], [0], [1], [0, 0, 1, 1], [], []>} : vector<4x50xbf16>, vector<50x256xbf16>, vector<4x256xf32> -> vector<4x256xf32>
      %63 = arith.truncf %62 : vector<4x256xf32> to vector<4x256xbf16>
      %c0_61 = arith.constant 0 : index
      %c4 = arith.constant 4 : index
      %c0_62 = arith.constant 0 : index
      %64 = vector.load %arg6[%c0_61, %c4, %c0_62] : memref<1x16x256xbf16, #tpu.memory_space<vmem>>, vector<1x4x256xbf16>
      %65 = vector.shape_cast %64 : vector<1x4x256xbf16> to vector<4x256xbf16>
      %66 = vector.shape_cast %63 : vector<4x256xbf16> to vector<1x4x256xbf16>
      tpu.vector_store %arg6[%c0_61, %c4, %c0_62], %66 {strides = array<i32>} : memref<1x16x256xbf16, #tpu.memory_space<vmem>>, vector<1x4x256xbf16>,
      %c2_63 = arith.constant 2 : index
      %c0_64 = arith.constant 0 : index
      %c0_65 = arith.constant 0 : index
      %67 = vector.load %arg7[%c2_63, %c0_64, %c0_65] : memref<4x4x50xf32, #tpu.memory_space<vmem>>, vector<1x4x50xf32>
      %68 = vector.shape_cast %67 : vector<1x4x50xf32> to vector<4x50xf32>
      %69 = arith.truncf %68 : vector<4x50xf32> to vector<4x50xbf16>
      %c2_66 = arith.constant 2 : index
      %c0_67 = arith.constant 0 : index
      %c0_68 = arith.constant 0 : index
      %70 = vector.load %arg4[%c2_66, %c0_67, %c0_68] : memref<4x50x256xbf16, #tpu.memory_space<vmem>>, vector<1x50x256xbf16>
      %71 = vector.shape_cast %70 : vector<1x50x256xbf16> to vector<50x256xbf16>
      %cst_69 = arith.constant dense<0.000000e+00> : vector<4x256xf32>
      %72 = tpu.matmul %69, %71, %cst_69 {dimension_numbers = #tpu.dot_dimension_numbers<[1], [0], [0], [1], [0, 0, 1, 1], [], []>} : vector<4x50xbf16>, vector<50x256xbf16>, vector<4x256xf32> -> vector<4x256xf32>
      %73 = arith.truncf %72 : vector<4x256xf32> to vector<4x256xbf16>
      %c0_70 = arith.constant 0 : index
      %c8 = arith.constant 8 : index
      %c0_71 = arith.constant 0 : index
      %74 = vector.load %arg6[%c0_70, %c8, %c0_71] : memref<1x16x256xbf16, #tpu.memory_space<vmem>>, vector<1x4x256xbf16>
      %75 = vector.shape_cast %74 : vector<1x4x256xbf16> to vector<4x256xbf16>
      %76 = vector.shape_cast %73 : vector<4x256xbf16> to vector<1x4x256xbf16>
      tpu.vector_store %arg6[%c0_70, %c8, %c0_71], %76 {strides = array<i32>} : memref<1x16x256xbf16, #tpu.memory_space<vmem>>, vector<1x4x256xbf16>,
      %c3_72 = arith.constant 3 : index
      %c0_73 = arith.constant 0 : index
      %c0_74 = arith.constant 0 : index
      %77 = vector.load %arg7[%c3_72, %c0_73, %c0_74] : memref<4x4x50xf32, #tpu.memory_space<vmem>>, vector<1x4x50xf32>
      %78 = vector.shape_cast %77 : vector<1x4x50xf32> to vector<4x50xf32>
      %79 = arith.truncf %78 : vector<4x50xf32> to vector<4x50xbf16>
      %c3_75 = arith.constant 3 : index
      %c0_76 = arith.constant 0 : index
      %c0_77 = arith.constant 0 : index
      %80 = vector.load %arg4[%c3_75, %c0_76, %c0_77] : memref<4x50x256xbf16, #tpu.memory_space<vmem>>, vector<1x50x256xbf16>
      %81 = vector.shape_cast %80 : vector<1x50x256xbf16> to vector<50x256xbf16>
      %cst_78 = arith.constant dense<0.000000e+00> : vector<4x256xf32>
      %82 = tpu.matmul %79, %81, %cst_78 {dimension_numbers = #tpu.dot_dimension_numbers<[1], [0], [0], [1], [0, 0, 1, 1], [], []>} : vector<4x50xbf16>, vector<50x256xbf16>, vector<4x256xf32> -> vector<4x256xf32>
      %83 = arith.truncf %82 : vector<4x256xf32> to vector<4x256xbf16>
      %c0_79 = arith.constant 0 : index
      %c12 = arith.constant 12 : index
      %c0_80 = arith.constant 0 : index
      %84 = vector.load %arg6[%c0_79, %c12, %c0_80] : memref<1x16x256xbf16, #tpu.memory_space<vmem>>, vector<1x4x256xbf16>
      %85 = vector.shape_cast %84 : vector<1x4x256xbf16> to vector<4x256xbf16>
      %86 = vector.shape_cast %83 : vector<4x256xbf16> to vector<1x4x256xbf16>
      tpu.vector_store %arg6[%c0_79, %c12, %c0_80], %86 {strides = array<i32>} : memref<1x16x256xbf16, #tpu.memory_space<vmem>>, vector<1x4x256xbf16>,
    } else {
    }
    return
  }
  func.func @transform_0(%arg0: i32, %arg1: i32) -> (i32, i32, i32) {
    %c0_i32 = arith.constant 0 : i32
    %c0_i32_0 = arith.constant 0 : i32
    return %arg0, %arg1, %c0_i32 : i32, i32, i32
  }
  func.func @transform_1(%arg0: i32, %arg1: i32) -> (i32, i32) {
    %c0_i32 = arith.constant 0 : i32
    %c0_i32_0 = arith.constant 0 : i32
    %c0_i32_1 = arith.constant 0 : i32
    return %c0_i32, %c0_i32_0 : i32, i32
  }
  func.func @transform_2(%arg0: i32, %arg1: i32) -> (i32, i32, i32) {
    %c0_i32 = arith.constant 0 : i32
    %c0_i32_0 = arith.constant 0 : i32
    %c0_i32_1 = arith.constant 0 : i32
    %c0_i32_2 = arith.constant 0 : i32
    return %c0_i32, %c0_i32_0, %c0_i32_1 : i32, i32, i32
  }
  func.func @transform_3(%arg0: i32, %arg1: i32) -> (i32, i32, i32) {
    %c0_i32 = arith.constant 0 : i32
    %c0_i32_0 = arith.constant 0 : i32
    %c0_i32_1 = arith.constant 0 : i32
    return %c0_i32, %c0_i32_0, %arg1 : i32, i32, i32
  }
  func.func @transform_4(%arg0: i32, %arg1: i32) -> (i32, i32, i32) {
    %c0_i32 = arith.constant 0 : i32
    %c0_i32_0 = arith.constant 0 : i32
    %c0_i32_1 = arith.constant 0 : i32
    return %arg0, %c0_i32, %c0_i32_0 : i32, i32, i32
  }
}

</mosaic_0001>

<bundles_post_ra>
// kernel: tpu_custom_call.1
= control target key start
LH: loop header
LB: loop body
LE: loop exit
PB: predicated region body
PF: predicated region fallthrough
CT: control target
= control target key end

     0   :  { %9 = vsyncpa [#allocation4], 0  ;;  %s1848_s0 = inlined_call_operand.vmem [shape: bf16[2,8,256], index: 0, kind: input, shape index: {}]   ;;  %s1849_s1 = inlined_call_operand.vmem [shape: bf16[256,50], index: 1, kind: input, shape index: {}]   ;;  %s1850_s2 = inlined_call_operand.vmem [shape: bf16[4,50,256], index: 2, kind: input, shape index: {}]   ;;  %s1851_s3 = inlined_call_operand.vmem [shape: bf16[4,4,8], index: 3, kind: input, shape index: {}]   ;;  %s1852_s4 = inlined_call_operand.hbm [shape: bf16[2,16,256], index: 4, kind: output, shape index: {}]  }
   0x1   :  { %11 = vsyncpa [#allocation4 + $0x1], 0  ;;  %s1553_s15 = smov 0   ;;  %s1555_s16 = smov 0  }
   0x2   :  { %s1557_s17 = smov 0   ;;  %s1559_s18 = smov 0  }
   0x3   :  { %s1561_s19 = smov 0   ;;  %s1563_s20 = smov 0  }
   0x4 LB: > { %s1156_s21 = sadd.s32 4294967295, %s1520_s20   ;;  %s1157_s22 = sadd.s32 4294967294, %s1520_s20   ;;  %s1520_s20 = sphi %s1563_s20, %s17_s20   ;;  %s1516_s19 = sphi %s1561_s19, %s1859_s19   ;;  %s1512_s18 = sphi %s1559_s18, %s1858_s18   ;;  %s1508_s17 = sphi %s1557_s17, %s1857_s17   ;;  %s1504_s16 = sphi %s1555_s16, %s1856_s16   ;;  %s1500_s15 = sphi %s1553_s15, %s1855_s15  }
   0x5   : > { %s29_s23 = sadd.s32 1, %s1516_s19  ;;  %s132_s24 = sadd.s32 1, %s1508_s17 }
   0x6   : > { %p31_p0 = scmp.ge.s32.totalorder %s29_s23, 2  ;;  %p142_p1 = scmp.ne.s32.totalorder %s1508_s17, %s1504_s16 }
   0x7   : > { %p143_p2 = scmp.eq.s32.totalorder %s1156_s21, 1  ;;  %p148_p3 = scmp.ne.s32.totalorder %s1504_s16, %s1500_s15 }
   0x8   : > { %s1861_s23 = smov (%p31_p0, %s29_s23), 0  ;;  %p149_p5 = scmp.eq.s32.totalorder %s1157_s22, 1 }
   0x9   : > { %p1593_p4 = por %p143_p2, %p142_p1  ;;  %s129_s26 = ssub.s32 %s1516_s19, %s1861_s23 }
   0xa   : > { %p1161_p6 = scmp.ge.s32.totalorder %s1520_s20, 1  ;;  %p130_p7 = scmp.eq.s32.totalorder %s129_s26, 0 }
   0xb   : > { %p1600_p8 = por %p149_p5, %p148_p3  ;;  %p192_p9 = scmp.lt.s32.totalorder %s1520_s20, 3 }
   0xc   : > { %s1606_s28 = scalar_select %p130_p7, %s1508_s17, %s132_s24  }
   0xd   : > { %p193_p10 = pnand %p1161_p6, %p192_p9 }
   0xe   : > { %v1380_v0 = vld [vmem:[%s1849_s1 + $0x40] sm:$0xff] (!%p193_p10)   ;;  %v1382_v2 = vld [vmem:[%s1849_s1 + $0x48] sm:$0xff] (!%p193_p10)   ;;  %p226_p11 = scmp.lt.s32.totalorder (!%p193_p10), %s1512_s18, 1  ;;  %v1384_v4 = vld [vmem:[%s1849_s1 + $0x50] sm:$0xff] (!%p193_p10)   ;;  %v1522_v19 = vmov (!%p193_p10), 0.0   ;;  %vm1523_vm0 = vmmov (!%p193_p10), 0  }
   0xf   : > { %196 = sbr.rel (%p193_p10) target bundleno = 748 (0x2ec), region = 36  ;;  %v1381_v1 = vld [vmem:[%s1849_s1] sm:$0xff] (!%p193_p10)   ;;  %1266 = vmatprep.subr.bf16.mxu0 (!%p193_p10), %v1380_v0  ;;  %v1383_v3 = vld [vmem:[%s1849_s1 + $0x8] sm:$0xff] (!%p193_p10)   ;;  %v1385_v5 = vld [vmem:[%s1849_s1 + $0x10] sm:$0xff] (!%p193_p10)   ;;  %1296 = vmatprep.subr.bf16.mxu1 (!%p193_p10), %v1522_v19  ;;  %vm244_vm1 = vcmask (!%p193_p10), 404480   ;;  %vm432_vm2 = vcmask (!%p193_p10), 1043456  }
  0x10   : > { %1267 = vmatpush3.bf16.msra.mxu0 (!%p193_p10), %v1381_v1  ;;  %v1386_v6 = vld [vmem:[%s1849_s1 + $0x58] sm:$0xff] (!%p193_p10)   ;;  %v1388_v8 = vld [vmem:[%s1849_s1 + $0x60] sm:$0xff] (!%p193_p10)   ;;  %v1390_v10 = vld [vmem:[%s1849_s1 + $0x68] sm:$0xff] (!%p193_p10)   ;;  %1298 = vmatprep.mubr.msk.bf16.mxu1 (!%p193_p10), %vm1523_vm0, %v1522_v19  ;;  %245 = vst.msk [vmem:[#allocation2] sm:$0xf] (!%p193_p10), %vm244_vm1, %v1522_v19  ;;  %vm428_vm3 = vcmask (!%p193_p10), 64512  }
  0x11   : > { %1268 = vmatprep.subr.bf16.mxu0 (!%p193_p10), %v1382_v2  ;;  %v1387_v7 = vld [vmem:[%s1849_s1 + $0x18] sm:$0xff] (!%p193_p10)   ;;  %v1389_v9 = vld [vmem:[%s1849_s1 + $0x20] sm:$0xff] (!%p193_p10)   ;;  %v1391_v12 = vld [vmem:[%s1849_s1 + $0x28] sm:$0xff] (!%p193_p10)   ;;  %246 = vst.msk [vmem:[#allocation2 + $0x4] sm:$0xf] (!%p193_p10), %vm244_vm1, %v1522_v19  ;;  %vm677_vm4 = vcmask (!%p193_p10), 1040384  }
  0x12   : > { %v1392_v14 = vld [vmem:[%s1849_s1 + $0x70] sm:$0xff] (!%p193_p10)   ;;  %v1394_v16 = vld [vmem:[%s1849_s1 + $0x78] sm:$0xff] (!%p193_p10)   ;;  %247 = vst.msk [vmem:[#allocation2 + $0x8] sm:$0xf] (!%p193_p10), %vm244_vm1, %v1522_v19  ;;  %248 = vst.msk [vmem:[#allocation2 + $0xc] sm:$0xf] (!%p193_p10), %vm244_vm1, %v1522_v19 }
  0x13   : > { %v1393_v15 = vld [vmem:[%s1849_s1 + $0x30] sm:$0xff] (!%p193_p10)   ;;  %v1395_v17 = vld [vmem:[%s1849_s1 + $0x38] sm:$0xff] (!%p193_p10)   ;;  %v427_v27 = vld [vmem:[%s1851_s3] sm:$0x3] (!%p193_p10)  ;;  %v1524_v45 = vmov (!%p193_p10), 0   ;;  %vm673_vm5 = vcmask (!%p193_p10), 408576  }
  0x14   : > { %1269 = vmatpush3.bf16.msra.mxu0 (!%p193_p10), %v1383_v3  ;;  %v1184_v28 = vld [vmem:[%s1851_s3 + $0x2] sm:$0x3] (!%p193_p10)  ;;  %v1186_v29 = vld [vmem:[%s1851_s3 + $0x4] sm:$0x3] (!%p193_p10)  ;;  %v1188_v31 = vld [vmem:[%s1851_s3 + $0x6] sm:$0x3] (!%p193_p10) }
  0x15   : > { %1270 = vmatprep.subr.bf16.mxu0 (!%p193_p10), %v1384_v4  ;;  %v1400_v30 = vld [vmem:[%s1850_s2 + $0x4] ss:$8 sps:$4 sm:$0xff] (!%p193_p10)   ;;  %v1398_v32 = vld [vmem:[%s1850_s2] ss:$8 sps:$4 sm:$0xff] (!%p193_p10)   ;;  %v1403_v33 = vld [vmem:[%s1850_s2 + $0x14] ss:$8 sps:$4 sm:$0xff] (!%p193_p10)  }
  0x16   : > { %s227_s13 = scalar_select %p226_p11, %s1512_s18, 1  ;;  %v1401_v34 = vld [vmem:[%s1850_s2 + $0x10] ss:$8 sps:$4 sm:$0xff]   ;;  %v1404_v35 = vld [vmem:[%s1850_s2 + $0x20] ss:$8 sps:$4 sm:$0xff]  }
  0x17   : > { %v1406_v36 = vld [vmem:[%s1850_s2 + $0x24] ss:$8 sps:$4 sm:$0xff]   ;;  %v1407_v37 = vld [vmem:[%s1850_s2 + $0x38] ss:$8 sps:$4 sm:$0xff]   ;;  %v637_v39 = vld [vmem:[%s1850_s2 + $0x30] sm:$0x11] }
  0x18   : > { %s1260_s26 = sshll.u32 %s227_s13, 3  ;;  %1271 = vmatpush3.bf16.msra.mxu0 %v1385_v5  ;;  %v1409_v38 = vld [vmem:[%s1850_s2 + $0x3c] ss:$8 sps:$4 sm:$0xff]   ;;  %v1197_v40 = vcombine.high %v637_v39, %v637_v39  ;;  %v1413_v41 = vld [vmem:[%s1850_s2 + $0x4c] ss:$8 sps:$4 sm:$0xff]   ;;  %v1196_v42 = vcombine.low %v637_v39, %v637_v39  ;;  %s223_s8 = sand.u32 1, %s1504_s16  }
  0x19   : > { %1272 = vmatprep.subr.bf16.mxu0 %v1386_v6  ;;  %s234_s9 = scalar_lea.vmem %s1848_s0, %s1260_s26  ;;  %v1411_v43 = vld [vmem:[%s1850_s2 + $0x48] ss:$8 sps:$4 sm:$0xff]   ;;  %v1417_v46 = vld [vmem:[%s1850_s2 + $0x5c] ss:$8 sps:$4 sm:$0xff]   ;;  %v1415_v48 = vld [vmem:[%s1850_s2 + $0x58] ss:$8 sps:$4 sm:$0xff]  }
  0x1a   : > { %v249_v11 = vld [vmem:[%s234_s9] sm:$0xff]  ;;  %v679_v44 = vsel %vm677_vm4, %v1196_v42, 0  ;;  %v1420_v47 = vld [vmem:[%s1850_s2 + $0x74] ss:$8 sps:$4 sm:$0xff]   ;;  %v1207_v49 = vld [vmem:[%s1850_s2 + $0x68] sm:$0x11] }
  0x1b   : > { %v1166_v13 = vcombine.high %v249_v11, %v249_v11  ;;  %v1165_v18 = vcombine.low %v249_v11, %v249_v11  ;;  %v1215_v50 = vcombine.high %v1207_v49, %v1207_v49  ;;  %v1214_v51 = vcombine.low %v1207_v49, %v1207_v49  ;;  %v1431_v53 = vld [vmem:[%s1850_s2 + $0xac] ss:$8 sps:$4 sm:$0xff]   ;;  %v426_v54 = vld [vmem:[#allocation2] sm:$0xf]  ;;  %v480_v60 = vld [vmem:[#allocation2 + $0x4] sm:$0xf] }
  0x1c   : > { %1273 = vmatpush3.bf16.msra.mxu0 %v1387_v7  ;;  %v1418_v2 = vld [vmem:[%s1850_s2 + $0x70] ss:$8 sps:$4 sm:$0xff]   ;;  %v1424_v5 = vld [vmem:[%s1850_s2 + $0x84] ss:$8 sps:$4 sm:$0xff]   ;;  %v529_v6 = vld [vmem:[#allocation2 + $0x8] sm:$0xf] }
  0x1d   : > { %1274 = vmatprep.subr.bf16.mxu0 %v1388_v8  ;;  %417 = vmatprep.mubr.bf16.mxu0 %v1166_v13  ;;  %v783_v52 = vsel %vm677_vm4, %v1214_v51, 0  ;;  %v1422_v7 = vld [vmem:[%s1850_s2 + $0x80] ss:$8 sps:$4 sm:$0xff]   ;;  %v1428_v8 = vld [vmem:[%s1850_s2 + $0x94] ss:$8 sps:$4 sm:$0xff]   ;;  %s1162_s9 = sshll.u32 %s223_s8, 4 }
  0x1e   : > { %v1426_v13 = vld [vmem:[%s1850_s2 + $0x90] ss:$8 sps:$4 sm:$0xff]   ;;  %s225_s10 = scalar_lea.vmem [#allocation3], %s1162_s9  ;;  %s1265_s12 = sshll.u32 %s1512_s18, 8 }
  0x1f   : > { %s1062_s11 = sshll.u32 %s225_s10, 4  ;;  %s1798_s21 = scalar_lea.hbm %s1852_s4, %s1265_s12  ;;  %s1793_s11 = int_to_ptr.vmem [resolvable:$true] %s1062_s11 }
  0x20   : > { %1275 = vmatpush3.bf16.msra.mxu0 %v1389_v9  ;;  %s1802_s22 = scalar_lea.sflag [#allocation4], %s223_s8  ;;  %s1442_s24 = scalar_lea.vmem %s1793_s11, 256 }
  0x21   : > { %1276 = vmatprep.subr.bf16.mxu0 %v1390_v10  ;;  %v1225_v10 = vld [vmem:[%s1850_s2 + $0xa0] sm:$0x11]  ;;  %p1443_p12 = scmp.ne.s32.totalorder %s1793_s11, %s1442_s24  ;;  %s1525_s18 = smov [#allocation3]  }
  0x22   : > { %s1446_s26 = sshll.u32 %s1525_s18, 4  ;;  %s1447_s26 = int_to_ptr.vmem [resolvable:$false] %s1446_s26 }
  0x23   : > { %p1444_p13 = pnand %p1443_p12, %p1593_p4  ;;  %s1448_s29 = scalar_lea.vmem %s1447_s26, 512 }
  0x24   : > { %1277 = vmatpush3.bf16.msra.mxu0 %v1391_v12  ;;  %p1449_p1 = scmp.lt.s32.totalorder %s1793_s11, %s1447_s26  ;;  %p1450_p2 = scmp.lt.s32.totalorder %s1448_s29, %s1442_s24 }
  0x25   : > { %1278 = vmatprep.subr.bf16.mxu0 %v1392_v14  ;;  %p1445_p0 = pneg %p1444_p13 }
  0x26   : > { %p1451_p3 = por %p1450_p2, %p1449_p1 }
  0x28   : > { %1279 = vmatpush3.bf16.msra.mxu0 %v1393_v15  ;;  %p1452_p5 = pnand %p1451_p3, %p1445_p0 }
  0x29   : > { %1280 = vmatprep.subr.bf16.mxu0 %v1394_v16  ;;  %v1429_v16 = vld [vmem:[%s1850_s2 + $0xa8] ss:$8 sps:$4 sm:$0xff]  }
  0x2c   : > { %1281 = vmatpush3.bf16.msra.mxu0 %v1395_v17 }
  0x2d   : > { %788 = vmatprep.subr.bf16.mxu0 %v1409_v38 }
  0x2f   : > { %418 = vmatmul.mubr.bf16.vlgmr.msra.gmra.mrb[0].mxu0 %v1165_v18 }
  0x30   : > { %789 = vmatpush1.bf16.msra.mxu0 %v1407_v37  ;;  %820 = vmatprep.mubr.bf16.mxu0 %v1524_v45 }
  0x31   : > { %790 = vmatprep.subr.bf16.mxu0 %v1413_v41 }
  0x34   : > { %791 = vmatpush1.bf16.msra.mxu0 %v1411_v43 }
  0x35   : > { %792 = vmatprep.subr.bf16.mxu0 %v1417_v46 }
  0x38   : > { %793 = vmatpush1.bf16.msra.mxu0 %v1415_v48 }
  0x39   : > { %1216 = vmatprep.subr.msk.bf16.mxu0 %vm677_vm4, %v1215_v50 }
  0x3c   : > { %795 = vmatpush1.bf16.msra.mxu0 %v783_v52 }
  0x3d   : > { %997 = vmatprep.subr.bf16.mxu0 %v1431_v53 }
 0x102   : > { %v1282_v20 = vpop.f32.mrb[0].mxu0 }
 0x103   : > { %v1283_v21 = vpop.f32.mrb[1].mxu0 }
 0x104   : > { %v1284_v22 = vadd.f32 %v1283_v21, %v1282_v20  ;;  %v1285_v23 = vpop.f32.mrb[2].mxu0  ;;  %v1435_v20 = vld [vmem:[%s1850_s2 + $0xbc] ss:$8 sps:$4 sm:$0xff]   ;;  %v1232_v21 = vcombine.low %v1225_v10, %v1225_v10 }
 0x105   : > { %v1286_v24 = vpop.f32.mrb[3].mxu0  ;;  %v1433_v23 = vld [vmem:[%s1850_s2 + $0xb8] ss:$8 sps:$4 sm:$0xff]  }
 0x106   : > { %v425_v25 = vpack.c.bf16 %v1284_v22, %v1284_v22  ;;  %v578_v22 = vld [vmem:[#allocation2 + $0xc] sm:$0xf]  ;;  %v888_v24 = vsel %vm677_vm4, %v1232_v21, 0 }
 0x108   : > { %v434_v26 = vsel %vm432_vm2, %v425_v25, 0  ;;  %v1439_v25 = vld [vmem:[%s1850_s2 + $0xcc] ss:$8 sps:$4 sm:$0xff]  }
 0x109   : > { %1297 = vmatpush3.bf16.msra.mxu1 %v434_v26 }
 0x10a   : > { %1302 = vmatprep.subr.bf16.mxu1 %v1522_v19 }
 0x10c   : > { %1299 = vmatmul.mubr.msk.bf16.vlgmr.msra.gmra.mrb[0].mxu1 %vm428_vm3, %v427_v27  ;;  %v1243_v27 = vld [vmem:[%s1850_s2 + $0xd8] sm:$0x11] }
 0x10d   : > { %1303 = vmatpush3.bf16.msra.mxu1 %v434_v26  ;;  %1304 = vmatprep.mubr.msk.bf16.mxu1 %vm1523_vm0, %v1522_v19 }
 0x10e   : > { %1308 = vmatprep.subr.bf16.mxu1 %v1522_v19 }
 0x114   : > { %1305 = vmatmul.mubr.msk.bf16.vlgmr.msra.gmra.mrb[4].mxu1 %vm428_vm3, %v1184_v28 }
 0x115   : > { %1309 = vmatpush3.bf16.msra.mxu1 %v434_v26  ;;  %1310 = vmatprep.mubr.msk.bf16.mxu1 %vm1523_vm0, %v1522_v19 }
 0x116   : > { %1314 = vmatprep.subr.bf16.mxu1 %v1522_v19 }
 0x11c   : > { %1311 = vmatmul.mubr.msk.bf16.vlgmr.msra.gmra.mrb[8].mxu1 %vm428_vm3, %v1186_v29 }
 0x11d   : > { %1315 = vmatpush3.bf16.msra.mxu1 %v434_v26  ;;  %1316 = vmatprep.mubr.msk.bf16.mxu1 %vm1523_vm0, %v1522_v19  ;;  %v1233_v19 = vcombine.high %v1225_v10, %v1225_v10 }
 0x11e   : > { %684 = vmatprep.subr.bf16.mxu1 %v1400_v30 }
 0x124   : > { %1317 = vmatmul.mubr.msk.bf16.vlgmr.msra.gmra.mrb[12].mxu1 %vm428_vm3, %v1188_v31 }
 0x125   : > { %685 = vmatpush1.bf16.msra.mxu1 %v1398_v32  ;;  %716 = vmatprep.mubr.bf16.mxu1 %v1524_v45  ;;  %v1437_v32 = vld [vmem:[%s1850_s2 + $0xc8] ss:$8 sps:$4 sm:$0xff]  }
 0x126   : > { %686 = vmatprep.subr.bf16.mxu1 %v1403_v33 }
 0x129   : > { %687 = vmatpush1.bf16.msra.mxu1 %v1401_v34 }
 0x12a   : > { %688 = vmatprep.subr.bf16.mxu1 %v1406_v36  ;;  %v1250_v36 = vcombine.low %v1243_v27, %v1243_v27 }
 0x12c   : > { %v992_v37 = vsel %vm677_vm4, %v1250_v36, 0 }
 0x12d   : > { %689 = vmatpush1.bf16.msra.mxu1 %v1404_v35  ;;  %v1251_v35 = vcombine.high %v1243_v27, %v1243_v27 }
 0x12e   : > { %1198 = vmatprep.subr.msk.bf16.mxu1 %vm677_vm4, %v1197_v40 }
 0x131   : > { %691 = vmatpush1.bf16.msra.mxu1 %v679_v44 }
 0x132   : > { %893 = vmatprep.subr.bf16.mxu1 %v1420_v47 }
 0x1df   : > { %v470_v55 = vpop.f32.mrb[0].mxu1 }
 0x1e0   : > { %v476_v56 = vadd.f32 %v470_v55, %v426_v54  ;;  %v1300_v57 = vpop.f32.mrb[1].mxu1 }
 0x1e1   : > { %v473_v58 = vpop.f32.mrb[2].mxu1 }
 0x1e2   : > { %478 = vst.msk [vmem:[#allocation2] sm:$0xf] %vm244_vm1, %v476_v56  ;;  %v1301_v59 = vpop.f32.mrb[3].mxu1 }
 0x1e7   : > { %v520_v61 = vpop.f32.mrb[4].mxu1 }
 0x1e8   : > { %v526_v62 = vadd.f32 %v520_v61, %v480_v60  ;;  %v1306_v63 = vpop.f32.mrb[5].mxu1 }
 0x1e9   : > { %v523_v0 = vpop.f32.mrb[6].mxu1  ;;  %v629_v1 = vld [vmem:[#allocation2] sm:$0xf] }
 0x1ea   : > { %527 = vst.msk [vmem:[#allocation2 + $0x4] sm:$0xf] %vm244_vm1, %v526_v62  ;;  %v1307_v3 = vpop.f32.mrb[7].mxu1  ;;  %v630_v4 = vpack.c.bf16 %v629_v1, %v629_v1 }
 0x1ec   : > { %1199 = vmatmul.mubr.msk.bf16.vlgmr.msra.gmra.mrb[16].mxu1 %vm673_vm5, %v630_v4 }
 0x1ed   : > { %894 = vmatpush1.bf16.msra.mxu1 %v1418_v2  ;;  %925 = vmatprep.mubr.bf16.mxu1 %v1524_v45 }
 0x1ee   : > { %895 = vmatprep.subr.bf16.mxu1 %v1424_v5 }
 0x1ef   : > { %v569_v9 = vpop.f32.mrb[8].mxu1 }
 0x1f0   : > { %v575_v11 = vadd.f32 %v569_v9, %v529_v6  ;;  %v1312_v12 = vpop.f32.mrb[9].mxu1 }
 0x1f1   : > { %v572_v14 = vpop.f32.mrb[10].mxu1  ;;  %896 = vmatpush1.bf16.msra.mxu1 %v1422_v7  ;;  %v734_v15 = vld [vmem:[#allocation2 + $0x4] sm:$0xf] }
 0x1f2   : > { %576 = vst.msk [vmem:[#allocation2 + $0x8] sm:$0xf] %vm244_vm1, %v575_v11  ;;  %v1313_v17 = vpop.f32.mrb[11].mxu1  ;;  %v735_v18 = vpack.c.bf16 %v734_v15, %v734_v15  ;;  %897 = vmatprep.subr.bf16.mxu1 %v1428_v8 }
 0x1f4   : > { %1217 = vmatmul.mubr.msk.bf16.vlgmr.msra.gmra.mrb[4].mxu0 %vm673_vm5, %v735_v18 }
 0x1f5   : > { %898 = vmatpush1.bf16.msra.mxu1 %v1426_v13  ;;  %998 = vmatpush1.bf16.msra.mxu0 %v1429_v16 }
 0x1f6   : > { %1234 = vmatprep.subr.msk.bf16.mxu1 %vm677_vm4, %v1233_v19  ;;  %999 = vmatprep.subr.bf16.mxu0 %v1435_v20 }
 0x1f7   : > { %v618_v26 = vpop.f32.mrb[12].mxu1  ;;  %1029 = vmatprep.mubr.bf16.mxu0 %v1524_v45 }
 0x1f8   : > { %v624_v28 = vadd.f32 %v618_v26, %v578_v22  ;;  %v1318_v29 = vpop.f32.mrb[13].mxu1 }
 0x1f9   : > { %v621_v30 = vpop.f32.mrb[14].mxu1  ;;  %900 = vmatpush1.bf16.msra.mxu1 %v888_v24  ;;  %1000 = vmatpush1.bf16.msra.mxu0 %v1433_v23  ;;  %v839_v31 = vld [vmem:[#allocation2 + $0x8] sm:$0xf] }
 0x1fa   : > { %625 = vst.msk [vmem:[#allocation2 + $0xc] sm:$0xf] %vm244_vm1, %v624_v28  ;;  %v1319_v33 = vpop.f32.mrb[15].mxu1  ;;  %v840_v34 = vpack.c.bf16 %v839_v31, %v839_v31  ;;  %1001 = vmatprep.subr.bf16.mxu0 %v1439_v25 }
 0x1fc   : > { %1235 = vmatmul.mubr.msk.bf16.vlgmr.msra.gmra.mrb[20].mxu1 %vm673_vm5, %v840_v34 }
 0x1fd   : > { %1002 = vmatpush1.bf16.msra.mxu0 %v1437_v32 }
 0x1fe   : > { %1252 = vmatprep.subr.msk.bf16.mxu0 %vm677_vm4, %v1251_v35 }
 0x201   : > { %1004 = vmatpush1.bf16.msra.mxu0 %v992_v37  ;;  %v943_v38 = vld [vmem:[#allocation2 + $0xc] sm:$0xf] }
 0x202   : > { %v944_v39 = vpack.c.bf16 %v943_v38, %v943_v38 }
 0x204   : > { %1253 = vmatmul.mubr.msk.bf16.vlgmr.msra.gmra.mrb[8].mxu0 %vm673_vm5, %v944_v39 }
 0x2bf   : > { %v718_v40 = vpop.f32.mrb[16].mxu1 }
 0x2c0   : > { %v720_v41 = vpop.f32.mrb[17].mxu1 }
 0x2c1   : > { %v1261_v42 = vpack.c.bf16 %v720_v41, %v718_v40  ;;  %v722_v43 = vpop.f32.mrb[18].mxu1 }
 0x2c2   : > { %v723_v44 = vpop.f32.mrb[19].mxu1 }
 0x2c3   : > { %733 = vst [vmem:[%s225_s10] sm:$0x33] %v1261_v42 }
 0x2c7   : > { %v822_v45 = vpop.f32.mrb[4].mxu0 }
 0x2c8   : > { %v824_v46 = vpop.f32.mrb[5].mxu0 }
 0x2c9   : > { %v1262_v47 = vpack.c.bf16 %v824_v46, %v822_v45  ;;  %v826_v48 = vpop.f32.mrb[6].mxu0 }
 0x2ca   : > { %v827_v49 = vpop.f32.mrb[7].mxu0 }
 0x2cb   : > { %v836_v50 = vrot.slane %v1262_v47, 6 }
 0x2cd   : > { %838 = vst [vmem:[%s225_s10] sm:$0xcc] %v836_v50 }
 0x2cf   : > { %v927_v51 = vpop.f32.mrb[20].mxu1 }
 0x2d0   : > { %v929_v52 = vpop.f32.mrb[21].mxu1 }
 0x2d1   : > { %v1263_v53 = vpack.c.bf16 %v929_v52, %v927_v51  ;;  %v931_v54 = vpop.f32.mrb[22].mxu1 }
 0x2d2   : > { %v932_v55 = vpop.f32.mrb[23].mxu1 }
 0x2d3   : > { %942 = vst [vmem:[%s225_s10 + $0x8] sm:$0x33] %v1263_v53 }
 0x2d7   : > { %v1031_v56 = vpop.f32.mrb[8].mxu0 }
 0x2d8   : > { %v1033_v57 = vpop.f32.mrb[9].mxu0 }
 0x2d9   : > { %v1264_v58 = vpack.c.bf16 %v1033_v57, %v1031_v56  ;;  %v1035_v59 = vpop.f32.mrb[10].mxu0 }
 0x2da   : > { %v1036_v60 = vpop.f32.mrb[11].mxu0 }
 0x2db   : > { %v1045_v61 = vrot.slane %v1264_v58, 6 }
 0x2dd   : > { %1047 = vst [vmem:[%s225_s10 + $0x8] sm:$0xcc] %v1045_v61 }
 0x2de   : > { %1455 = shalt.err (!%p1452_p5)
}
 0x2df   : > { %s1456_s30 = scalar_lea.hbm %s1798_s21, 256  ;;  %s1460_s7 = scalar_lea.hbm %s1852_s4, 512 }
 0x2e0   : > { %p1457_p6 = scmp.ne.s32.totalorder %s1798_s21, %s1456_s30  ;;  %p1461_p10 = scmp.lt.u32.totalorder %s1798_s21, %s1852_s4 }
 0x2e1   : > { %p1462_p11 = scmp.lt.u32.totalorder %s1460_s7, %s1456_s30  ;;  %p1464_p13 = scmp.lt.u32.totalorder %s1456_s30, %s1798_s21 }
 0x2e2   : > { %p1458_p7 = pnand %p1457_p6, %p1593_p4 }
 0x2e3   : > { %p1463_p12 = por %p1462_p11, %p1461_p10 }
 0x2e4   : > { %p1459_p9 = pneg %p1458_p7 }
 0x2e5   : > { %p1465_p0 = por %p1464_p13, %p1463_p12 }
 0x2e7   : > { %p1466_p1 = pnand %p1465_p0, %p1459_p9 }
 0x2e9   : > { %1469 = shalt.err (!%p1466_p1)
}
 0x2ea   : > { %s1526_s10 = smov 128   ;;  %s1527_s12 = smov 8  }
 0x2eb   : > { %1320 = dma.vmem_to_hbm [thread:$0]  (%p1593_p4), %s1793_s11, 256, %s1798_s21, %s1802_s22, %s1526_s10, %s1526_s10, %s1527_s12  }
 0x2ec PF: > { %p1326_p2 = scmp.ge.s32.totalorder %s1520_s20, 2  ;;  %s1077_s13 = sand.u32 1, %s1500_s15  }
 0x2ed   : > { %s1078_s14 = scalar_lea.sflag [#allocation4], %s1077_s13 }
 0x2ee   : > { %p1323_p3 = pnand %p1326_p2, %p1600_p8 }
 0x2f0   : > { %1495 = dma.done.wait (!%p1323_p3), %s1078_s14, 256  }
 0x2f1   : > { %1497 = vsyncadd (!%p1323_p3), %s1078_s14, 4294967040  ;;  %s17_s20 = sadd.s32 1, %s1520_s20   ;;  %s1855_s15 = smov %s1504_s16 }
 0x2f2   : > { %p14_p5 = scmp.ge.s32.totalorder %s17_s20, 4   ;;  %s1856_s16 = smov %s1508_s17 }
 0x2f3   : > { %s1857_s17 = smov %s1606_s28  ;;  %s1858_s18 = smov %s1516_s19 }
 0x2f4   : > { %s1859_s19 = smov %s1861_s23  ;;  %16 = sbr.rel (!%p14_p5) target bundleno = 4 (0x4), region = 91 }
 0x2fb   :  { %1083 = vsyncpa [#allocation4], 1 }
 0x2fc   :  { %1085 = vsyncpa [#allocation4 + $0x1], 1 }

</bundles_post_ra>
